<compile_context>
chip_gen: v7x
topology: tpu7x:2x2x1
jax: 0.10.0
libtpu: 0.0.40
codegen_flags: <defaults>
</compile_context>

<pallas_src>
import functools

import jax
import jax.numpy as jnp
from jax.experimental import pallas as pl
from jax.experimental.pallas import tpu as pltpu

# MLP dims: input_size -> 512 -> 256 -> 128 -> 64 -> 32 -> 16 -> 6
LAYER_DIMS = [512, 256, 128, 64, 32, 16, 6]
OUT_PAD = 128  # lane-dense padded width of the final layer


def _round_up(n, m):
    return ((n + m - 1) // m) * m


def mlp_kernel(x_ref,
               w1, b1, w2, b2, w3, b3, w4, b4, w5, b5, w6, b6, w7, b7,
               alpha_ref,
               o_ref):
    """Whole 7-layer MLP with PReLU activations, fused in one kernel.

    x_ref:     VMEM (TB, F_in), bf16
    w_i:       VMEM (in_i, out_i), bf16 (w7 padded to 128 cols)
    b_i:       VMEM (1, out_i), f32   (b7 padded to 128 cols)
    alpha_ref: SMEM (6,) f32 — scalar PReLU slopes (num_parameters=1 per layer)
    o_ref:     VMEM (TB, 128), f32 (only cols [:6] are meaningful)
    """
    h = x_ref[...]  # bf16 feeds the MXU directly

    hidden = [(w1, b1), (w2, b2), (w3, b3), (w4, b4), (w5, b5), (w6, b6)]
    for i, (w, b) in enumerate(hidden):
        # bf16 x bf16 -> f32 accumulation on the MXU; bias + PReLU in f32.
        acc = jnp.dot(h, w[...], preferred_element_type=jnp.float32) + b[...]
        acc = jnp.where(acc >= 0, acc, alpha_ref[i] * acc)
        h = acc.astype(jnp.bfloat16)

    # Final layer: no activation. Output block is lane-dense (128 wide).
    out = jnp.dot(h, w7[...], preferred_element_type=jnp.float32) + b7[...]
    o_ref[...] = out.astype(o_ref.dtype)


def make_params(input_size, key):
    """Deterministic parameter init (shapes match the PyTorch module)."""
    dims = [input_size] + LAYER_DIMS
    params = []
    for i in range(7):
        key, kw, kb = jax.random.split(key, 3)
        fan_in, fan_out = dims[i], dims[i + 1]
        bound = 1.0 / jnp.sqrt(jnp.float32(fan_in))
        # Store W as [in, out] (transpose of PyTorch's [out, in]).
        w = jax.random.uniform(kw, (fan_in, fan_out), jnp.float32, -bound, bound)
        b = jax.random.uniform(kb, (1, fan_out), jnp.float32, -bound, bound)
        params.append((w, b))
    # PReLU init: 0.25 per layer (PyTorch default), num_parameters=1.
    alphas = jnp.full((6,), 0.25, dtype=jnp.float32)
    return params, alphas


@functools.partial(jax.jit, static_argnames=("tile_b",))
def net_forward(x, params_flat, alphas, tile_b=256):
    """Forward pass of Net. x: f32[B, F]; params_flat: [w1,b1,...,w7,b7] f32."""
    B, F = x.shape
    dims = [F] + LAYER_DIMS
    n_out = LAYER_DIMS[-1]

    # Choose the batch tile: at most tile_b, at least enough to cover B,
    # always a multiple of 16 (bf16 sublane packing). Pad B up to the tile.
    tile = min(_round_up(tile_b, 16), _round_up(B, 16))
    b_pad = _round_up(B, tile)

    x_p = x
    if b_pad != B:
        x_p = jnp.pad(x, ((0, b_pad - B), (0, 0)))
    x_bf16 = x_p.astype(jnp.bfloat16)

    # Prepare params: bf16 weights, f32 biases; final layer padded to 128 cols.
    prepared = []
    for li in range(7):
        w = params_flat[2 * li].astype(jnp.bfloat16)
        b = params_flat[2 * li + 1].astype(jnp.float32)
        if li == 6:
            w = jnp.pad(w, ((0, 0), (0, OUT_PAD - n_out)))
            b = jnp.pad(b, ((0, 0), (0, OUT_PAD - n_out)))
        prepared.append(w)
        prepared.append(b)

    # BlockSpecs: x and out are tiled over the batch; weights/biases sit fully
    # in VMEM with constant index_maps (fetched once, reused every grid step).
    x_spec = pl.BlockSpec((tile, F), lambda i: (i, 0))
    wb_specs = []
    for li in range(7):
        out_d = OUT_PAD if li == 6 else dims[li + 1]
        wb_specs.append(pl.BlockSpec((dims[li], out_d), lambda i: (0, 0)))
        wb_specs.append(pl.BlockSpec((1, out_d), lambda i: (0, 0)))
    alpha_spec = pl.BlockSpec(memory_space=pltpu.MemorySpace.SMEM)
    out_spec = pl.BlockSpec((tile, OUT_PAD), lambda i: (i, 0))

    out_padded = pl.pallas_call(
        mlp_kernel,
        out_shape=jax.ShapeDtypeStruct((b_pad, OUT_PAD), jnp.float32),
        grid_spec=pltpu.PrefetchScalarGridSpec(
            num_scalar_prefetch=0,
            grid=(b_pad // tile,),
            in_specs=[x_spec] + wb_specs + [alpha_spec],
            out_specs=out_spec,
        ),
        compiler_params=pltpu.CompilerParams(
            dimension_semantics=("parallel",)),
    )(x_bf16, *prepared, alphas)

    # Strip batch padding and the lane-dense output padding.
    return out_padded[:B, :n_out]


def reference_forward(x, params, alphas):
    """Pure-JAX mirror of the kernel math (bf16 matmul inputs, f32 accum)."""
    h = x.astype(jnp.bfloat16)
    for i, (w, b) in enumerate(params[:-1]):
        acc = jnp.dot(h, w.astype(jnp.bfloat16),
                      preferred_element_type=jnp.float32) + b
        acc = jnp.where(acc >= 0, acc, alphas[i] * acc)
        h = acc.astype(jnp.bfloat16)
    w, b = params[-1]
    return jnp.dot(h, w.astype(jnp.bfloat16),
                   preferred_element_type=jnp.float32) + b


if __name__ == "__main__":
    key = jax.random.PRNGKey(0)
    input_size = 32

    key, kx, kp = jax.random.split(key, 3)
    params, alphas = make_params(input_size, kp)
    params_flat = [t for wb in params for t in wb]

    # Small batch: collapses to a single grid step (tile = 16).
    x_small = jax.random.normal(kx, (8, input_size), dtype=jnp.float32)
    out_small = jax.block_until_ready(net_forward(x_small, params_flat, alphas))
    ref_small = reference_forward(x_small, params, alphas)
    assert out_small.shape == (8, 6)
    assert jnp.allclose(out_small, ref_small, atol=1e-2, rtol=1e-2), \
        "mismatch vs reference (small batch)"

    # Non-divisible batch with multiple grid steps (tile = 16 -> grid of 3).
    key, kx2 = jax.random.split(key)
    x_ragged = jax.random.normal(kx2, (40, input_size), dtype=jnp.float32)
    out_ragged = jax.block_until_ready(
        net_forward(x_ragged, params_flat, alphas, tile_b=16))
    ref_ragged = reference_forward(x_ragged, params, alphas)
    assert out_ragged.shape == (40, 6)
    assert jnp.allclose(out_ragged, ref_ragged, atol=1e-2, rtol=1e-2), \
        "mismatch vs reference (ragged batch)"

    print("KERNEL_OK")
</pallas_src>

<mosaic_0001>
module attributes {stable_mosaic.version = 11 : i64} {
  func.func @mlp_kernel(%arg0: i32, %arg1: memref<16x32xbf16, #tpu.memory_space<vmem>>, %arg2: memref<32x512xbf16, #tpu.memory_space<vmem>>, %arg3: memref<1x512xf32, #tpu.memory_space<vmem>>, %arg4: memref<512x256xbf16, #tpu.memory_space<vmem>>, %arg5: memref<1x256xf32, #tpu.memory_space<vmem>>, %arg6: memref<256x128xbf16, #tpu.memory_space<vmem>>, %arg7: memref<1x128xf32, #tpu.memory_space<vmem>>, %arg8: memref<128x64xbf16, #tpu.memory_space<vmem>>, %arg9: memref<1x64xf32, #tpu.memory_space<vmem>>, %arg10: memref<64x32xbf16, #tpu.memory_space<vmem>>, %arg11: memref<1x32xf32, #tpu.memory_space<vmem>>, %arg12: memref<32x16xbf16, #tpu.memory_space<vmem>>, %arg13: memref<1x16xf32, #tpu.memory_space<vmem>>, %arg14: memref<16x128xbf16, #tpu.memory_space<vmem>>, %arg15: memref<1x128xf32, #tpu.memory_space<vmem>>, %arg16: memref<6xf32, #tpu.memory_space<smem>>, %arg17: memref<16x128xf32, #tpu.memory_space<vmem>>) attributes {dimension_semantics = [#tpu.dimension_semantics<parallel>], iteration_bounds = array<i64: 1>, scalar_prefetch = 0 : i64, scratch_operands = 0 : i64, tpu.core_type = #tpu.core_type<tc>, window_params = [{transform_indices = @transform_0, window_bounds = array<i64: 16, 32>}, {pipeline_mode = #tpu.pipeline_mode<synchronous>, transform_indices = @transform_1, window_bounds = array<i64: 32, 512>}, {pipeline_mode = #tpu.pipeline_mode<synchronous>, transform_indices = @transform_2, window_bounds = array<i64: 1, 512>}, {pipeline_mode = #tpu.pipeline_mode<synchronous>, transform_indices = @transform_3, window_bounds = array<i64: 512, 256>}, {pipeline_mode = #tpu.pipeline_mode<synchronous>, transform_indices = @transform_4, window_bounds = array<i64: 1, 256>}, {pipeline_mode = #tpu.pipeline_mode<synchronous>, transform_indices = @transform_5, window_bounds = array<i64: 256, 128>}, {pipeline_mode = #tpu.pipeline_mode<synchronous>, transform_indices = @transform_6, window_bounds = array<i64: 1, 128>}, {pipeline_mode = #tpu.pipeline_mode<synchronous>, transform_indices = @transform_7, window_bounds = array<i64: 128, 64>}, {pipeline_mode = #tpu.pipeline_mode<synchronous>, transform_indices = @transform_8, window_bounds = array<i64: 1, 64>}, {pipeline_mode = #tpu.pipeline_mode<synchronous>, transform_indices = @transform_9, window_bounds = array<i64: 64, 32>}, {pipeline_mode = #tpu.pipeline_mode<synchronous>, transform_indices = @transform_10, window_bounds = array<i64: 1, 32>}, {pipeline_mode = #tpu.pipeline_mode<synchronous>, transform_indices = @transform_11, window_bounds = array<i64: 32, 16>}, {pipeline_mode = #tpu.pipeline_mode<synchronous>, transform_indices = @transform_12, window_bounds = array<i64: 1, 16>}, {pipeline_mode = #tpu.pipeline_mode<synchronous>, transform_indices = @transform_13, window_bounds = array<i64: 16, 128>}, {pipeline_mode = #tpu.pipeline_mode<synchronous>, transform_indices = @transform_14, window_bounds = array<i64: 1, 128>}, {transform_indices = @transform_15, window_bounds = array<i64: 6>}, {transform_indices = @transform_16, window_bounds = array<i64: 16, 128>}]} {
    %c0 = arith.constant 0 : index
    %c0_0 = arith.constant 0 : index
    %0 = vector.load %arg1[%c0, %c0_0] : memref<16x32xbf16, #tpu.memory_space<vmem>>, vector<16x32xbf16>
    %c0_1 = arith.constant 0 : index
    %c0_2 = arith.constant 0 : index
    %1 = vector.load %arg2[%c0_1, %c0_2] : memref<32x512xbf16, #tpu.memory_space<vmem>>, vector<32x512xbf16>
    %cst = arith.constant dense<0.000000e+00> : vector<16x512xf32>
    %2 = tpu.matmul %0, %1, %cst {dimension_numbers = #tpu.dot_dimension_numbers<[1], [0], [0], [1], [0, 0, 1, 1], [], []>} : vector<16x32xbf16>, vector<32x512xbf16>, vector<16x512xf32> -> vector<16x512xf32>
    %c0_3 = arith.constant 0 : index
    %c0_4 = arith.constant 0 : index
    %3 = vector.load %arg3[%c0_3, %c0_4] : memref<1x512xf32, #tpu.memory_space<vmem>>, vector<1x512xf32>
    %4 = vector.broadcast %3 : vector<1x512xf32> to vector<16x512xf32>
    %5 = arith.addf %2, %4 : vector<16x512xf32>
    %cst_5 = arith.constant 0.000000e+00 : f32
    %6 = vector.broadcast %cst_5 : f32 to vector<16x512xf32>
    %7 = arith.cmpf oge, %5, %6 : vector<16x512xf32>
    %c0_6 = arith.constant 0 : index
    %8 = memref.load %arg16[%c0_6] : memref<6xf32, #tpu.memory_space<smem>>
    %9 = vector.broadcast %8 : f32 to vector<16x512xf32>
    %10 = arith.mulf %9, %5 : vector<16x512xf32>
    %11 = arith.select %7, %5, %10 : vector<16x512xi1>, vector<16x512xf32>
    %12 = arith.truncf %11 : vector<16x512xf32> to vector<16x512xbf16>
    %c0_7 = arith.constant 0 : index
    %c0_8 = arith.constant 0 : index
    %13 = vector.load %arg4[%c0_7, %c0_8] : memref<512x256xbf16, #tpu.memory_space<vmem>>, vector<512x256xbf16>
    %cst_9 = arith.constant dense<0.000000e+00> : vector<16x256xf32>
    %14 = tpu.matmul %12, %13, %cst_9 {dimension_numbers = #tpu.dot_dimension_numbers<[1], [0], [0], [1], [0, 0, 1, 1], [], []>} : vector<16x512xbf16>, vector<512x256xbf16>, vector<16x256xf32> -> vector<16x256xf32>
    %c0_10 = arith.constant 0 : index
    %c0_11 = arith.constant 0 : index
    %15 = vector.load %arg5[%c0_10, %c0_11] : memref<1x256xf32, #tpu.memory_space<vmem>>, vector<1x256xf32>
    %16 = vector.broadcast %15 : vector<1x256xf32> to vector<16x256xf32>
    %17 = arith.addf %14, %16 : vector<16x256xf32>
    %cst_12 = arith.constant 0.000000e+00 : f32
    %18 = vector.broadcast %cst_12 : f32 to vector<16x256xf32>
    %19 = arith.cmpf oge, %17, %18 : vector<16x256xf32>
    %c1 = arith.constant 1 : index
    %20 = memref.load %arg16[%c1] : memref<6xf32, #tpu.memory_space<smem>>
    %21 = vector.broadcast %20 : f32 to vector<16x256xf32>
    %22 = arith.mulf %21, %17 : vector<16x256xf32>
    %23 = arith.select %19, %17, %22 : vector<16x256xi1>, vector<16x256xf32>
    %24 = arith.truncf %23 : vector<16x256xf32> to vector<16x256xbf16>
    %c0_13 = arith.constant 0 : index
    %c0_14 = arith.constant 0 : index
    %25 = vector.load %arg6[%c0_13, %c0_14] : memref<256x128xbf16, #tpu.memory_space<vmem>>, vector<256x128xbf16>
    %cst_15 = arith.constant dense<0.000000e+00> : vector<16x128xf32>
    %26 = tpu.matmul %24, %25, %cst_15 {dimension_numbers = #tpu.dot_dimension_numbers<[1], [0], [0], [1], [0, 0, 1, 1], [], []>} : vector<16x256xbf16>, vector<256x128xbf16>, vector<16x128xf32> -> vector<16x128xf32>
    %c0_16 = arith.constant 0 : index
    %c0_17 = arith.constant 0 : index
    %27 = vector.load %arg7[%c0_16, %c0_17] : memref<1x128xf32, #tpu.memory_space<vmem>>, vector<1x128xf32>
    %28 = vector.broadcast %27 : vector<1x128xf32> to vector<16x128xf32>
    %29 = arith.addf %26, %28 : vector<16x128xf32>
    %cst_18 = arith.constant 0.000000e+00 : f32
    %30 = vector.broadcast %cst_18 : f32 to vector<16x128xf32>
    %31 = arith.cmpf oge, %29, %30 : vector<16x128xf32>
    %c2 = arith.constant 2 : index
    %32 = memref.load %arg16[%c2] : memref<6xf32, #tpu.memory_space<smem>>
    %33 = vector.broadcast %32 : f32 to vector<16x128xf32>
    %34 = arith.mulf %33, %29 : vector<16x128xf32>
    %35 = arith.select %31, %29, %34 : vector<16x128xi1>, vector<16x128xf32>
    %36 = arith.truncf %35 : vector<16x128xf32> to vector<16x128xbf16>
    %c0_19 = arith.constant 0 : index
    %c0_20 = arith.constant 0 : index
    %37 = vector.load %arg8[%c0_19, %c0_20] : memref<128x64xbf16, #tpu.memory_space<vmem>>, vector<128x64xbf16>
    %cst_21 = arith.constant dense<0.000000e+00> : vector<16x64xf32>
    %38 = tpu.matmul %36, %37, %cst_21 {dimension_numbers = #tpu.dot_dimension_numbers<[1], [0], [0], [1], [0, 0, 1, 1], [], []>} : vector<16x128xbf16>, vector<128x64xbf16>, vector<16x64xf32> -> vector<16x64xf32>
    %c0_22 = arith.constant 0 : index
    %c0_23 = arith.constant 0 : index
    %39 = vector.load %arg9[%c0_22, %c0_23] : memref<1x64xf32, #tpu.memory_space<vmem>>, vector<1x64xf32>
    %40 = vector.broadcast %39 : vector<1x64xf32> to vector<16x64xf32>
    %41 = arith.addf %38, %40 : vector<16x64xf32>
    %cst_24 = arith.constant 0.000000e+00 : f32
    %42 = vector.broadcast %cst_24 : f32 to vector<16x64xf32>
    %43 = arith.cmpf oge, %41, %42 : vector<16x64xf32>
    %c3 = arith.constant 3 : index
    %44 = memref.load %arg16[%c3] : memref<6xf32, #tpu.memory_space<smem>>
    %45 = vector.broadcast %44 : f32 to vector<16x64xf32>
    %46 = arith.mulf %45, %41 : vector<16x64xf32>
    %47 = arith.select %43, %41, %46 : vector<16x64xi1>, vector<16x64xf32>
    %48 = arith.truncf %47 : vector<16x64xf32> to vector<16x64xbf16>
    %c0_25 = arith.constant 0 : index
    %c0_26 = arith.constant 0 : index
    %49 = vector.load %arg10[%c0_25, %c0_26] : memref<64x32xbf16, #tpu.memory_space<vmem>>, vector<64x32xbf16>
    %cst_27 = arith.constant dense<0.000000e+00> : vector<16x32xf32>
    %50 = tpu.matmul %48, %49, %cst_27 {dimension_numbers = #tpu.dot_dimension_numbers<[1], [0], [0], [1], [0, 0, 1, 1], [], []>} : vector<16x64xbf16>, vector<64x32xbf16>, vector<16x32xf32> -> vector<16x32xf32>
    %c0_28 = arith.constant 0 : index
    %c0_29 = arith.constant 0 : index
    %51 = vector.load %arg11[%c0_28, %c0_29] : memref<1x32xf32, #tpu.memory_space<vmem>>, vector<1x32xf32>
    %52 = vector.broadcast %51 : vector<1x32xf32> to vector<16x32xf32>
    %53 = arith.addf %50, %52 : vector<16x32xf32>
    %cst_30 = arith.constant 0.000000e+00 : f32
    %54 = vector.broadcast %cst_30 : f32 to vector<16x32xf32>
    %55 = arith.cmpf oge, %53, %54 : vector<16x32xf32>
    %c4 = arith.constant 4 : index
    %56 = memref.load %arg16[%c4] : memref<6xf32, #tpu.memory_space<smem>>
    %57 = vector.broadcast %56 : f32 to vector<16x32xf32>
    %58 = arith.mulf %57, %53 : vector<16x32xf32>
    %59 = arith.select %55, %53, %58 : vector<16x32xi1>, vector<16x32xf32>
    %60 = arith.truncf %59 : vector<16x32xf32> to vector<16x32xbf16>
    %c0_31 = arith.constant 0 : index
    %c0_32 = arith.constant 0 : index
    %61 = vector.load %arg12[%c0_31, %c0_32] : memref<32x16xbf16, #tpu.memory_space<vmem>>, vector<32x16xbf16>
    %cst_33 = arith.constant dense<0.000000e+00> : vector<16x16xf32>
    %62 = tpu.matmul %60, %61, %cst_33 {dimension_numbers = #tpu.dot_dimension_numbers<[1], [0], [0], [1], [0, 0, 1, 1], [], []>} : vector<16x32xbf16>, vector<32x16xbf16>, vector<16x16xf32> -> vector<16x16xf32>
    %c0_34 = arith.constant 0 : index
    %c0_35 = arith.constant 0 : index
    %63 = vector.load %arg13[%c0_34, %c0_35] : memref<1x16xf32, #tpu.memory_space<vmem>>, vector<1x16xf32>
    %64 = vector.broadcast %63 : vector<1x16xf32> to vector<16x16xf32>
    %65 = arith.addf %62, %64 : vector<16x16xf32>
    %cst_36 = arith.constant 0.000000e+00 : f32
    %66 = vector.broadcast %cst_36 : f32 to vector<16x16xf32>
    %67 = arith.cmpf oge, %65, %66 : vector<16x16xf32>
    %c5 = arith.constant 5 : index
    %68 = memref.load %arg16[%c5] : memref<6xf32, #tpu.memory_space<smem>>
    %69 = vector.broadcast %68 : f32 to vector<16x16xf32>
    %70 = arith.mulf %69, %65 : vector<16x16xf32>
    %71 = arith.select %67, %65, %70 : vector<16x16xi1>, vector<16x16xf32>
    %72 = arith.truncf %71 : vector<16x16xf32> to vector<16x16xbf16>
    %c0_37 = arith.constant 0 : index
    %c0_38 = arith.constant 0 : index
    %73 = vector.load %arg14[%c0_37, %c0_38] : memref<16x128xbf16, #tpu.memory_space<vmem>>, vector<16x128xbf16>
    %cst_39 = arith.constant dense<0.000000e+00> : vector<16x128xf32>
    %74 = tpu.matmul %72, %73, %cst_39 {dimension_numbers = #tpu.dot_dimension_numbers<[1], [0], [0], [1], [0, 0, 1, 1], [], []>} : vector<16x16xbf16>, vector<16x128xbf16>, vector<16x128xf32> -> vector<16x128xf32>
    %c0_40 = arith.constant 0 : index
    %c0_41 = arith.constant 0 : index
    %75 = vector.load %arg15[%c0_40, %c0_41] : memref<1x128xf32, #tpu.memory_space<vmem>>, vector<1x128xf32>
    %76 = vector.broadcast %75 : vector<1x128xf32> to vector<16x128xf32>
    %77 = arith.addf %74, %76 : vector<16x128xf32>
    %c0_42 = arith.constant 0 : index
    %c0_43 = arith.constant 0 : index
    %78 = vector.load %arg17[%c0_42, %c0_43] : memref<16x128xf32, #tpu.memory_space<vmem>>, vector<16x128xf32>
    tpu.vector_store %arg17[%c0_42, %c0_43], %77 {strides = array<i32>} : memref<16x128xf32, #tpu.memory_space<vmem>>, vector<16x128xf32>,
    return
  }
  func.func @transform_0(%arg0: i32) -> (i32, i32) {
    %c0_i32 = arith.constant 0 : i32
    %c0_i32_0 = arith.constant 0 : i32
    return %arg0, %c0_i32 : i32, i32
  }
  func.func @transform_1(%arg0: i32) -> (i32, i32) {
    %c0_i32 = arith.constant 0 : i32
    %c0_i32_0 = arith.constant 0 : i32
    %c0_i32_1 = arith.constant 0 : i32
    return %c0_i32, %c0_i32_0 : i32, i32
  }
  func.func @transform_2(%arg0: i32) -> (i32, i32) {
    %c0_i32 = arith.constant 0 : i32
    %c0_i32_0 = arith.constant 0 : i32
    %c0_i32_1 = arith.constant 0 : i32
    return %c0_i32, %c0_i32_0 : i32, i32
  }
  func.func @transform_3(%arg0: i32) -> (i32, i32) {
    %c0_i32 = arith.constant 0 : i32
    %c0_i32_0 = arith.constant 0 : i32
    %c0_i32_1 = arith.constant 0 : i32
    return %c0_i32, %c0_i32_0 : i32, i32
  }
  func.func @transform_4(%arg0: i32) -> (i32, i32) {
    %c0_i32 = arith.constant 0 : i32
    %c0_i32_0 = arith.constant 0 : i32
    %c0_i32_1 = arith.constant 0 : i32
    return %c0_i32, %c0_i32_0 : i32, i32
  }
  func.func @transform_5(%arg0: i32) -> (i32, i32) {
    %c0_i32 = arith.constant 0 : i32
    %c0_i32_0 = arith.constant 0 : i32
    %c0_i32_1 = arith.constant 0 : i32
    return %c0_i32, %c0_i32_0 : i32, i32
  }
  func.func @transform_6(%arg0: i32) -> (i32, i32) {
    %c0_i32 = arith.constant 0 : i32
    %c0_i32_0 = arith.constant 0 : i32
    %c0_i32_1 = arith.constant 0 : i32
    return %c0_i32, %c0_i32_0 : i32, i32
  }
  func.func @transform_7(%arg0: i32) -> (i32, i32) {
    %c0_i32 = arith.constant 0 : i32
    %c0_i32_0 = arith.constant 0 : i32
    %c0_i32_1 = arith.constant 0 : i32
    return %c0_i32, %c0_i32_0 : i32, i32
  }
  func.func @transform_8(%arg0: i32) -> (i32, i32) {
    %c0_i32 = arith.constant 0 : i32
    %c0_i32_0 = arith.constant 0 : i32
    %c0_i32_1 = arith.constant 0 : i32
    return %c0_i32, %c0_i32_0 : i32, i32
  }
  func.func @transform_9(%arg0: i32) -> (i32, i32) {
    %c0_i32 = arith.constant 0 : i32
    %c0_i32_0 = arith.constant 0 : i32
    %c0_i32_1 = arith.constant 0 : i32
    return %c0_i32, %c0_i32_0 : i32, i32
  }
  func.func @transform_10(%arg0: i32) -> (i32, i32) {
    %c0_i32 = arith.constant 0 : i32
    %c0_i32_0 = arith.constant 0 : i32
    %c0_i32_1 = arith.constant 0 : i32
    return %c0_i32, %c0_i32_0 : i32, i32
  }
  func.func @transform_11(%arg0: i32) -> (i32, i32) {
    %c0_i32 = arith.constant 0 : i32
    %c0_i32_0 = arith.constant 0 : i32
    %c0_i32_1 = arith.constant 0 : i32
    return %c0_i32, %c0_i32_0 : i32, i32
  }
  func.func @transform_12(%arg0: i32) -> (i32, i32) {
    %c0_i32 = arith.constant 0 : i32
    %c0_i32_0 = arith.constant 0 : i32
    %c0_i32_1 = arith.constant 0 : i32
    return %c0_i32, %c0_i32_0 : i32, i32
  }
  func.func @transform_13(%arg0: i32) -> (i32, i32) {
    %c0_i32 = arith.constant 0 : i32
    %c0_i32_0 = arith.constant 0 : i32
    %c0_i32_1 = arith.constant 0 : i32
    return %c0_i32, %c0_i32_0 : i32, i32
  }
  func.func @transform_14(%arg0: i32) -> (i32, i32) {
    %c0_i32 = arith.constant 0 : i32
    %c0_i32_0 = arith.constant 0 : i32
    %c0_i32_1 = arith.constant 0 : i32
    return %c0_i32, %c0_i32_0 : i32, i32
  }
  func.func @transform_15(%arg0: i32) -> i32 {
    %c0_i32 = arith.constant 0 : i32
    %c0_i32_0 = arith.constant 0 : i32
    return %c0_i32 : i32
  }
  func.func @transform_16(%arg0: i32) -> (i32, i32) {
    %c0_i32 = arith.constant 0 : i32
    %c0_i32_0 = arith.constant 0 : i32
    return %arg0, %c0_i32 : i32, i32
  }
}

</mosaic_0001>

<bundles_post_ra>
// kernel: net_forward.1
= control target key start
LH: loop header
LB: loop body
LE: loop exit
PB: predicated region body
PF: predicated region fallthrough
CT: control target
= control target key end

     0   :  { %s2150_s0 = inlined_call_operand.vmem [shape: bf16[16,32], index: 0, kind: input, shape index: {}]   ;;  %s2151_s1 = inlined_call_operand.vmem [shape: bf16[32,512], index: 1, kind: input, shape index: {}]   ;;  %s2152_s2 = inlined_call_operand.vmem [shape: f32[1,512], index: 2, kind: input, shape index: {}]   ;;  %s2153_s3 = inlined_call_operand.vmem [shape: bf16[512,256], index: 3, kind: input, shape index: {}]   ;;  %s2154_s4 = inlined_call_operand.vmem [shape: f32[1,256], index: 4, kind: input, shape index: {}]   ;;  %s2155_s5 = inlined_call_operand.vmem [shape: bf16[256,128], index: 5, kind: input, shape index: {}]   ;;  %s2156_s6 = inlined_call_operand.vmem [shape: f32[1,128], index: 6, kind: input, shape index: {}]   ;;  %s2157_s7 = inlined_call_operand.vmem [shape: bf16[128,64], index: 7, kind: input, shape index: {}]   ;;  %s2158_s8 = inlined_call_operand.vmem [shape: f32[1,64], index: 8, kind: input, shape index: {}]   ;;  %s2159_s9 = inlined_call_operand.vmem [shape: bf16[64,32], index: 9, kind: input, shape index: {}]   ;;  %s2160_s10 = inlined_call_operand.vmem [shape: f32[1,32], index: 10, kind: input, shape index: {}]   ;;  %s2161_s11 = inlined_call_operand.vmem [shape: bf16[32,16], index: 11, kind: input, shape index: {}]   ;;  %s2162_s12 = inlined_call_operand.vmem [shape: f32[1,16], index: 12, kind: input, shape index: {}]   ;;  %s2163_s13 = inlined_call_operand.vmem [shape: bf16[16,128], index: 13, kind: input, shape index: {}]   ;;  %s2164_s14 = inlined_call_operand.vmem [shape: f32[1,128], index: 14, kind: input, shape index: {}]   ;;  %s2165_s15 = inlined_call_operand.vmem [shape: f32[6], index: 15, kind: input, shape index: {}]   ;;  %s2166_s16 = inlined_call_operand.vmem [shape: f32[16,128], index: 16, kind: output, shape index: {}]  }
   0x1   :  { %2167 = sst [smem:[#allocation5_spill]] %s2150_s0 }
   0x2   :  { %21 = vsyncpa [#allocation3], 0  ;;  %s58_s23 = sshll.u32 %s2165_s15, 4  ;;  %s59_s23 = int_to_ptr.vmem [resolvable:$true] %s58_s23 }
   0x3   :  { %s1662_s24 = scalar_lea.vmem %s59_s23, 16  ;;  %p1667_p1 = scmp.lt.s32.totalorder %s59_s23, %s59_s23 }
   0x4   :  { %p1663_p0 = scmp.ne.s32.totalorder %s59_s23, %s1662_s24  ;;  %p1668_p2 = scmp.lt.s32.totalorder %s1662_s24, %s1662_s24 }
   0x6   :  { %p1669_p3 = por %p1668_p2, %p1667_p1 }
   0x8   :  { %p1670_p4 = pnand %p1669_p3, %p1663_p0 }
   0xa   :  { %1673 = shalt.err (!%p1670_p4)
}
   0xb   :  { %s1676_s25 = smov [#allocation2]  }
   0xc   :  { %61 = dma.vmem_to_smem %s59_s23, 16, %s1676_s25, [#allocation3]  }
   0xd   :  { %1674 = dma.done.wait [#allocation3], 16  }
   0xe   :  { %1675 = vsyncadd [#allocation3], 4294967280 }
   0xf   :  { %65 = sfence }
  0x10   :  { %v1522_v0 = vld [vmem:[%s2151_s1 + $0x4] ss:$16 sps:$4 sm:$0xff]   ;;  %v1524_v1 = vld [vmem:[%s2151_s1] ss:$16 sps:$4 sm:$0xff]   ;;  %v1677_v2 = vmov 0   ;;  %s2168_s22 = sld [smem:[#allocation5_spill]]  ;;  %v79_v53 = vlaneseq }
  0x11   :  { %180 = vmatprep.mubr.bf16.mxu1 %v1677_v2  ;;  %148 = vmatprep.subr.bf16.mxu1 %v1522_v0  ;;  %v1525_v3 = vld [vmem:[%s2151_s1 + $0x24] ss:$16 sps:$4 sm:$0xff]   ;;  %v1527_v4 = vld [vmem:[%s2151_s1 + $0x20] ss:$16 sps:$4 sm:$0xff]   ;;  %v1531_v5 = vld [vmem:[%s2151_s1 + $0xc] ss:$16 sps:$4 sm:$0xff]  }
  0x12   :  { %149 = vmatpush1.bf16.msra.mxu1 %v1524_v1  ;;  %v1529_v7 = vld [vmem:[%s2151_s1 + $0x8] ss:$16 sps:$4 sm:$0xff]   ;;  %vm144_vm0 = vcmask 261120   ;;  %v1535_v8 = vld [vmem:[%s2153_s3 + $0x4] ss:$8 sps:$4 sm:$0xff]   ;;  %v1635_v47 = vld [vmem:[%s2155_s5 + $0x50] sm:$0xff]  }
  0x13   :  { %150 = vmatprep.subr.bf16.mxu1 %v1525_v3  ;;  %v1537_v9 = vld [vmem:[%s2153_s3] ss:$8 sps:$4 sm:$0xff]   ;;  %v1534_v10 = vld [vmem:[%s2151_s1 + $0x2c] ss:$16 sps:$4 sm:$0xff]   ;;  %660 = vmatprep.subr.bf16.mxu0 %v1535_v8  ;;  %v1540_v12 = vld [vmem:[%s2153_s3 + $0x10] ss:$8 sps:$4 sm:$0xff]  }
  0x14   :  { %v1538_v11 = vld [vmem:[%s2153_s3 + $0x14] ss:$8 sps:$4 sm:$0xff]   ;;  %661 = vmatpush1.bf16.msra.mxu0 %v1537_v9  ;;  %v1532_v13 = vld [vmem:[%s2151_s1 + $0x28] ss:$16 sps:$4 sm:$0xff]   ;;  %v1541_v14 = vld [vmem:[%s2153_s3 + $0x24] ss:$8 sps:$4 sm:$0xff]  }
  0x15   :  { %662 = vmatprep.subr.bf16.mxu0 %v1538_v11  ;;  %v1543_v15 = vld [vmem:[%s2153_s3 + $0x20] ss:$8 sps:$4 sm:$0xff]   ;;  %v1544_v16 = vld [vmem:[%s2153_s3 + $0x34] ss:$8 sps:$4 sm:$0xff]   ;;  %v1546_v17 = vld [vmem:[%s2153_s3 + $0x30] ss:$8 sps:$4 sm:$0xff]  }
  0x16   :  { %v1528_v6 = vld [vmem:[%s2168_s22] sm:$0xff]   ;;  %151 = vmatpush1.bf16.msra.mxu1 %v1527_v4  ;;  %v1550_v20 = vld [vmem:[%s2153_s3 + $0x54] ss:$8 sps:$4 sm:$0xff]   ;;  %v1552_v21 = vld [vmem:[%s2153_s3 + $0x50] ss:$8 sps:$4 sm:$0xff]   ;;  %v1926_v54 = vshrl.u32 %v79_v53, 7 }
  0x17   :  { %191 = vmatprep.subr.bf16.mxu1 %v1531_v5  ;;  %v1547_v18 = vld [vmem:[%s2153_s3 + $0x44] ss:$8 sps:$4 sm:$0xff]   ;;  %v1549_v19 = vld [vmem:[%s2153_s3 + $0x40] ss:$8 sps:$4 sm:$0xff]   ;;  %v1556_v24 = vld [vmem:[%s2153_s3 + $0x74] ss:$8 sps:$4 sm:$0xff]  }
  0x18   :  { %663 = vmatpush1.bf16.msra.mxu0 %v1540_v12  ;;  %v1553_v22 = vld [vmem:[%s2153_s3 + $0x64] ss:$8 sps:$4 sm:$0xff]   ;;  %v1555_v23 = vld [vmem:[%s2153_s3 + $0x60] ss:$8 sps:$4 sm:$0xff]   ;;  %v1558_v25 = vld [vmem:[%s2153_s3 + $0x70] ss:$8 sps:$4 sm:$0xff]  }
  0x19   :  { %1313 = vmatmul.mubr.msk.bf16.vlgmr.msra.gmra.mrb[0].mxu1 %vm144_vm0, %v1528_v6  ;;  %664 = vmatprep.subr.bf16.mxu0 %v1541_v14  ;;  %v1559_v26 = vld [vmem:[%s2153_s3 + $0x84] ss:$8 sps:$4 sm:$0xff]   ;;  %v1561_v27 = vld [vmem:[%s2153_s3 + $0x80] ss:$8 sps:$4 sm:$0xff]   ;;  %v1562_v28 = vld [vmem:[%s2153_s3 + $0x94] ss:$8 sps:$4 sm:$0xff]  }
  0x1a   :  { %192 = vmatpush1.bf16.msra.mxu1 %v1529_v7  ;;  %223 = vmatprep.mubr.bf16.mxu1 %v1677_v2  ;;  %v1564_v29 = vld [vmem:[%s2153_s3 + $0x90] ss:$8 sps:$4 sm:$0xff]   ;;  %v1565_v30 = vld [vmem:[%s2153_s3 + $0xa4] ss:$8 sps:$4 sm:$0xff]   ;;  %v1567_v31 = vld [vmem:[%s2153_s3 + $0xa0] ss:$8 sps:$4 sm:$0xff]  }
  0x1b   :  { %193 = vmatprep.subr.bf16.mxu1 %v1534_v10  ;;  %v1568_v32 = vld [vmem:[%s2153_s3 + $0xb4] ss:$8 sps:$4 sm:$0xff]   ;;  %v1570_v33 = vld [vmem:[%s2153_s3 + $0xb0] ss:$8 sps:$4 sm:$0xff]   ;;  %v1571_v34 = vld [vmem:[%s2153_s3 + $0xc4] ss:$8 sps:$4 sm:$0xff]  }
  0x1c   :  { %665 = vmatpush1.bf16.msra.mxu0 %v1543_v15  ;;  %v1573_v35 = vld [vmem:[%s2153_s3 + $0xc0] ss:$8 sps:$4 sm:$0xff]   ;;  %v1574_v36 = vld [vmem:[%s2153_s3 + $0xd4] ss:$8 sps:$4 sm:$0xff]   ;;  %v1576_v37 = vld [vmem:[%s2153_s3 + $0xd0] ss:$8 sps:$4 sm:$0xff]  }
  0x1d   :  { %666 = vmatprep.subr.bf16.mxu0 %v1544_v16  ;;  %v1577_v38 = vld [vmem:[%s2153_s3 + $0xe4] ss:$8 sps:$4 sm:$0xff]   ;;  %v1579_v39 = vld [vmem:[%s2153_s3 + $0xe0] ss:$8 sps:$4 sm:$0xff]   ;;  %v1580_v40 = vld [vmem:[%s2153_s3 + $0xf4] ss:$8 sps:$4 sm:$0xff]  }
  0x1e   :  { %194 = vmatpush1.bf16.msra.mxu1 %v1532_v13  ;;  %v1582_v41 = vld [vmem:[%s2153_s3 + $0xf0] ss:$8 sps:$4 sm:$0xff]   ;;  %v1585_v42 = vld [vmem:[%s2153_s3 + $0x104] ss:$8 sps:$4 sm:$0xff]   ;;  %s242_s15 = sld [smem:[#allocation2]]  ;;  %v81_v55 = vsub.s32 0, %v1926_v54 }
  0x1f   :  { %v1631_v43 = vld [vmem:[%s2155_s5 + $0x40] sm:$0xff]   ;;  %v1633_v45 = vld [vmem:[%s2155_s5 + $0x48] sm:$0xff]   ;;  %v1636_v48 = vld [vmem:[%s2155_s5 + $0x10] sm:$0xff]   ;;  %v85_v57 = vsub.s32 1, %v1926_v54  ;;  %v89_v0 = vsub.s32 2, %v1926_v54  ;;  %v93_v3 = vsub.s32 3, %v1926_v54 }
  0x20   :  { %667 = vmatpush1.bf16.msra.mxu0 %v1546_v17  ;;  %v1632_v44 = vld [vmem:[%s2155_s5] sm:$0xff]   ;;  %1423 = vmatprep.subr.bf16.mxu1 %v1631_v43  ;;  %v1634_v46 = vld [vmem:[%s2155_s5 + $0x8] sm:$0xff]   ;;  %v1637_v49 = vld [vmem:[%s2155_s5 + $0x58] sm:$0xff]   ;;  %s1379_s17 = sld [smem:[#allocation2 + $0x1]]  ;;  %vm1679_vm13 = vmmov 0   ;;  %s1397_s0 = sld [smem:[#allocation2 + $0x2]] }
  0x21   :  { %1314 = vmatmul.mubr.msk.bf16.vlgmr.msra.gmra.mrb[4].mxu1 %vm144_vm0, %v1528_v6  ;;  %668 = vmatprep.subr.bf16.mxu0 %v1547_v18  ;;  %v1638_v50 = vld [vmem:[%s2155_s5 + $0x18] sm:$0xff]   ;;  %v1639_v51 = vld [vmem:[%s2155_s5 + $0x60] sm:$0xff]   ;;  %s1407_s22 = sld [smem:[#allocation2 + $0x3]]  ;;  %s1414_s1 = sld [smem:[#allocation2 + $0x4]] }
  0x22   :  { %1424 = vmatpush3.bf16.msra.mxu1 %v1632_v44  ;;  %v1640_v52 = vld [vmem:[%s2155_s5 + $0x20] sm:$0xff]   ;;  %v1592_v43 = vld [vmem:[%s2153_s3 + $0x130] ss:$8 sps:$4 sm:$0xff]   ;;  %s1419_s29 = sld [smem:[#allocation2 + $0x5]] }
  0x23   :  { %1425 = vmatprep.subr.bf16.mxu1 %v1633_v45  ;;  %v77_v56 = vld [vmem:[%s2152_s2] sm:$0xf]  ;;  %v1597_v44 = vld [vmem:[%s2153_s3 + $0x144] ss:$8 sps:$4 sm:$0xff]  }
  0x24   :  { %669 = vmatpush1.bf16.msra.mxu0 %v1549_v19  ;;  %v82_v58 = vrot.slane %v77_v56, %v81_v55  ;;  %v86_v59 = vrot.slane %v77_v56, %v85_v57  ;;  %v243_v61 = vstv %s242_s15  ;;  %v90_v10 = vrot.slane %v77_v56, %v89_v0  ;;  %v1595_v45 = vld [vmem:[%s2153_s3 + $0x140] ss:$8 sps:$4 sm:$0xff]  }
  0x25   :  { %670 = vmatprep.subr.bf16.mxu0 %v1550_v20  ;;  %v94_v12 = vrot.slane %v77_v56, %v93_v3  ;;  %v1583_v20 = vld [vmem:[%s2153_s3 + $0x100] ss:$8 sps:$4 sm:$0xff]   ;;  %v1612_v56 = vld [vmem:[%s2153_s3 + $0x194] ss:$8 sps:$4 sm:$0xff]   ;;  %v1627_v3 = vld [vmem:[%s2153_s3 + $0x1e4] ss:$8 sps:$4 sm:$0xff]  }
  0x26   :  { %1426 = vmatpush3.bf16.msra.mxu1 %v1634_v46  ;;  %v1600_v46 = vld [vmem:[%s2153_s3 + $0x154] ss:$8 sps:$4 sm:$0xff]   ;;  %v1607_v53 = vld [vmem:[%s2153_s3 + $0x180] ss:$8 sps:$4 sm:$0xff]  }
  0x27   :  { %1427 = vmatprep.subr.bf16.mxu1 %v1635_v47  ;;  %v1598_v47 = vld [vmem:[%s2153_s3 + $0x150] ss:$8 sps:$4 sm:$0xff]   ;;  %v1619_v0 = vld [vmem:[%s2153_s3 + $0x1c0] ss:$8 sps:$4 sm:$0xff]  }
  0x28   :  { %671 = vmatpush1.bf16.msra.mxu0 %v1552_v21 }
  0x29   :  { %672 = vmatprep.subr.bf16.mxu0 %v1553_v22 }
  0x2a   :  { %1428 = vmatpush3.bf16.msra.mxu1 %v1636_v48  ;;  %v1603_v48 = vld [vmem:[%s2153_s3 + $0x164] ss:$8 sps:$4 sm:$0xff]  }
  0x2b   :  { %1429 = vmatprep.subr.bf16.mxu1 %v1637_v49  ;;  %v1601_v49 = vld [vmem:[%s2153_s3 + $0x160] ss:$8 sps:$4 sm:$0xff]  }
  0x2c   :  { %673 = vmatpush1.bf16.msra.mxu0 %v1555_v23  ;;  %v1588_v23 = vld [vmem:[%s2153_s3 + $0x114] ss:$8 sps:$4 sm:$0xff]  }
  0x2d   :  { %674 = vmatprep.subr.bf16.mxu0 %v1556_v24 }
  0x2e   :  { %1430 = vmatpush3.bf16.msra.mxu1 %v1638_v50  ;;  %v1606_v50 = vld [vmem:[%s2153_s3 + $0x174] ss:$8 sps:$4 sm:$0xff]  }
  0x2f   :  { %1431 = vmatprep.subr.bf16.mxu1 %v1639_v51  ;;  %v1604_v51 = vld [vmem:[%s2153_s3 + $0x170] ss:$8 sps:$4 sm:$0xff]  }
  0x30   :  { %675 = vmatpush1.bf16.msra.mxu0 %v1558_v25 }
  0x31   :  { %676 = vmatprep.subr.bf16.mxu0 %v1559_v26 }
  0x32   :  { %1432 = vmatpush3.bf16.msra.mxu1 %v1640_v52  ;;  %v1609_v52 = vld [vmem:[%s2153_s3 + $0x184] ss:$8 sps:$4 sm:$0xff]  }
  0x34   :  { %677 = vmatpush1.bf16.msra.mxu0 %v1561_v27 }
  0x35   :  { %678 = vmatprep.subr.bf16.mxu0 %v1562_v28 }
  0x38   :  { %679 = vmatpush1.bf16.msra.mxu0 %v1564_v29 }
  0x39   :  { %680 = vmatprep.subr.bf16.mxu0 %v1565_v30 }
  0x3c   :  { %681 = vmatpush1.bf16.msra.mxu0 %v1567_v31  ;;  %v1586_v31 = vld [vmem:[%s2153_s3 + $0x110] ss:$8 sps:$4 sm:$0xff]  }
  0x3d   :  { %682 = vmatprep.subr.bf16.mxu0 %v1568_v32 }
  0x40   :  { %683 = vmatpush1.bf16.msra.mxu0 %v1570_v33 }
  0x41   :  { %684 = vmatprep.subr.bf16.mxu0 %v1571_v34  ;;  %v1591_v34 = vld [vmem:[%s2153_s3 + $0x124] ss:$8 sps:$4 sm:$0xff]  }
  0x44   :  { %685 = vmatpush1.bf16.msra.mxu0 %v1573_v35 }
  0x45   :  { %686 = vmatprep.subr.bf16.mxu0 %v1574_v36 }
  0x48   :  { %687 = vmatpush1.bf16.msra.mxu0 %v1576_v37 }
  0x49   :  { %688 = vmatprep.subr.bf16.mxu0 %v1577_v38 }
  0x4c   :  { %689 = vmatpush1.bf16.msra.mxu0 %v1579_v39 }
  0x4d   :  { %690 = vmatprep.subr.bf16.mxu0 %v1580_v40  ;;  %v1589_v40 = vld [vmem:[%s2153_s3 + $0x120] ss:$8 sps:$4 sm:$0xff]  }
  0x50   :  { %691 = vmatpush1.bf16.msra.mxu0 %v1582_v41 }
  0x51   :  { %703 = vmatprep.subr.bf16.mxu0 %v1585_v42  ;;  %v1594_v42 = vld [vmem:[%s2153_s3 + $0x134] ss:$8 sps:$4 sm:$0xff]  }
  0xec   :  { %v182_v60 = vpop.f32.mrb[0].mxu1 }
  0xed   :  { %v183_v62 = vadd.f32 %v182_v60, %v82_v58  ;;  %v184_v63 = vpop.f32.mrb[1].mxu1  ;;  %v1613_v60 = vld [vmem:[%s2153_s3 + $0x1a0] ss:$8 sps:$4 sm:$0xff]  }
  0xee   :  { %v185_v1 = vadd.f32 %v184_v63, %v86_v59  ;;  %v186_v2 = vpop.f32.mrb[2].mxu1  ;;  %v1621_v63 = vld [vmem:[%s2153_s3 + $0x1c4] ss:$8 sps:$4 sm:$0xff]  }
  0xef   :  { %v244_v4 = vmul.f32 %v243_v61, %v183_v62  ;;  %v187_v5 = vadd.f32 %v186_v2, %v82_v58  ;;  %v188_v6 = vpop.f32.mrb[3].mxu1  ;;  %vm234_vm1 = vcmp.ge.f32.partialorder %v183_v62, 0.0  ;;  %v1610_v58 = vld [vmem:[%s2153_s3 + $0x190] ss:$8 sps:$4 sm:$0xff]  }
  0xf0   :  { %v245_v7 = vmul.f32 %v243_v61, %v185_v1  ;;  %v189_v8 = vadd.f32 %v188_v6, %v86_v59  ;;  %vm235_vm3 = vcmp.ge.f32.partialorder %v185_v1, 0.0  ;;  %v1615_v59 = vld [vmem:[%s2153_s3 + $0x1a4] ss:$8 sps:$4 sm:$0xff]   ;;  %v1622_v2 = vld [vmem:[%s2153_s3 + $0x1d0] ss:$8 sps:$4 sm:$0xff]  }
  0xf1   :  { %vm238_vm2 = vcmp.ge.f32.partialorder %v187_v5, 0.0  ;;  %v248_v9 = vmul.f32 %v243_v61, %v187_v5  ;;  %v252_v13 = vsel %vm234_vm1, %v183_v62, %v244_v4  ;;  %v1616_v62 = vld [vmem:[%s2153_s3 + $0x1b0] ss:$8 sps:$4 sm:$0xff]   ;;  %v1625_v4 = vld [vmem:[%s2153_s3 + $0x1e0] ss:$8 sps:$4 sm:$0xff]  }
  0xf2   :  { %v249_v11 = vmul.f32 %v243_v61, %v189_v8  ;;  %vm239_vm4 = vcmp.ge.f32.partialorder %v189_v8, 0.0  ;;  %v253_v15 = vsel %vm235_vm3, %v185_v1, %v245_v7  ;;  %v1624_v1 = vld [vmem:[%s2153_s3 + $0x1d4] ss:$8 sps:$4 sm:$0xff]   ;;  %v1628_v6 = vld [vmem:[%s2153_s3 + $0x1f0] ss:$8 sps:$4 sm:$0xff]   ;;  %v1641_v7 = vld [vmem:[%s2155_s5 + $0x68] sm:$0xff]  }
  0xf3   :  { %v256_v14 = vsel %vm238_vm2, %v187_v5, %v248_v9  ;;  %v1630_v5 = vld [vmem:[%s2153_s3 + $0x1f4] ss:$8 sps:$4 sm:$0xff]   ;;  %1433 = vmatprep.subr.bf16.mxu1 %v1641_v7  ;;  %vm1107_vm3 = vcmask 523264  }
  0xf4   :  { %v257_v16 = vsel %vm239_vm4, %v189_v8, %v249_v11  ;;  %v260_v17 = vpack.c.bf16 %v256_v14, %v252_v13  ;;  %v225_v18 = vpop.f32.mrb[4].mxu1  ;;  %v1642_v8 = vld [vmem:[%s2155_s5 + $0x28] sm:$0xff]   ;;  %v1643_v9 = vld [vmem:[%s2155_s5 + $0x70] sm:$0xff]   ;;  %v1645_v11 = vld [vmem:[%s2155_s5 + $0x78] sm:$0xff]   ;;  %v1678_v13 = vmov 0.0  }
  0xf5   :  { %v261_v19 = vpack.c.bf16 %v257_v16, %v253_v15  ;;  %v226_v21 = vadd.f32 %v225_v18, %v90_v10  ;;  %v227_v22 = vpop.f32.mrb[5].mxu1  ;;  %1434 = vmatpush3.bf16.msra.mxu1 %v1642_v8  ;;  %v328_v14 = vld [vmem:[%s2154_s4] sm:$0x3]  ;;  %v751_v18 = vstv %s1379_s17 }
  0xf6   :  { %v228_v24 = vadd.f32 %v227_v22, %v94_v12  ;;  %v229_v25 = vpop.f32.mrb[6].mxu1  ;;  %1435 = vmatprep.subr.bf16.mxu1 %v1643_v9  ;;  %v333_v15 = vrot.slane %v328_v14, %v81_v55  ;;  %v337_v16 = vrot.slane %v328_v14, %v85_v57  ;;  %v1660_v14 = vld [vmem:[%s2161_s11 + $0x8] sm:$0xff]  }
  0xf7   :  { %692 = vmatprep.mubr.bf16.mxu0 %v261_v19  ;;  %vm236_vm5 = vcmp.ge.f32.partialorder %v226_v21, 0.0  ;;  %v246_v26 = vmul.f32 %v243_v61, %v226_v21  ;;  %v230_v27 = vadd.f32 %v229_v25, %v90_v10  ;;  %v231_v28 = vpop.f32.mrb[7].mxu1  ;;  %v1644_v10 = vld [vmem:[%s2155_s5 + $0x30] sm:$0xff]  }
  0xf8   :  { %693 = vmatmul.mubr.bf16.vlgmr.msra.gmra.mrb[0].mxu0 %v260_v17  ;;  %vm237_vm6 = vcmp.ge.f32.partialorder %v228_v24, 0.0  ;;  %v247_v29 = vmul.f32 %v243_v61, %v228_v24  ;;  %v232_v30 = vadd.f32 %v231_v28, %v94_v12  ;;  %v1646_v12 = vld [vmem:[%s2155_s5 + $0x38] sm:$0xff]  }
  0xf9   :  { %704 = vmatpush1.bf16.msra.mxu0 %v1583_v20  ;;  %v1948_v32 = vsel %vm236_vm5, %v226_v21, %v246_v26  ;;  %vm240_vm7 = vcmp.ge.f32.partialorder %v230_v27, 0.0  ;;  %v250_v33 = vmul.f32 %v243_v61, %v230_v27  ;;  %1436 = vmatpush3.bf16.msra.mxu1 %v1644_v10 }
  0xfa   :  { %705 = vmatprep.subr.bf16.mxu0 %v1588_v23  ;;  %vm241_vm8 = vcmp.ge.f32.partialorder %v232_v30, 0.0  ;;  %v251_v35 = vmul.f32 %v243_v61, %v232_v30  ;;  %v255_v36 = vsel %vm237_vm6, %v228_v24, %v247_v29  ;;  %v1618_v61 = vld [vmem:[%s2153_s3 + $0x1b4] ss:$8 sps:$4 sm:$0xff]   ;;  %1437 = vmatprep.subr.bf16.mxu1 %v1645_v11 }
  0xfb   :  { %v258_v37 = vsel %vm240_vm7, %v230_v27, %v250_v33  ;;  %v1647_v33 = vld [vmem:[%s2157_s7] sm:$0xff]   ;;  %vm1252_vm7 = vcmask 130048  }
  0xfc   :  { %v262_v38 = vpack.c.bf16 %v258_v37, %v1948_v32  ;;  %v259_v39 = vsel %vm241_vm8, %v232_v30, %v251_v35  ;;  %v1649_v35 = vld [vmem:[%s2157_s7 + $0x10] sm:$0xff]   ;;  %v1651_v37 = vld [vmem:[%s2157_s7 + $0x20] sm:$0xff]  }
  0xfd   :  { %706 = vmatpush1.bf16.msra.mxu0 %v1586_v31  ;;  %v263_v41 = vpack.c.bf16 %v259_v39, %v255_v36  ;;  %1438 = vmatpush3.bf16.msra.mxu1 %v1646_v12  ;;  %v1650_v36 = vld [vmem:[%s2157_s7 + $0x18] sm:$0xff]   ;;  %v1653_v39 = vld [vmem:[%s2157_s7 + $0x30] sm:$0xff]   ;;  %v1659_v12 = vld [vmem:[%s2161_s11] sm:$0xff]  }
  0xfe   :  { %707 = vmatprep.subr.bf16.mxu0 %v1591_v34  ;;  %1464 = vmatprep.subr.bf16.mxu1 %v1678_v13  ;;  %v1648_v34 = vld [vmem:[%s2157_s7 + $0x8] sm:$0xff]  }
  0xff   :  { %735 = vmatprep.mubr.bf16.mxu0 %v263_v41 }
 0x101   :  { %708 = vmatpush1.bf16.msra.mxu0 %v1589_v40  ;;  %v1654_v40 = vld [vmem:[%s2157_s7 + $0x38] sm:$0xff]  }
 0x102   :  { %709 = vmatprep.subr.bf16.mxu0 %v1594_v42  ;;  %v1380_v42 = vld [vmem:[%s2156_s6] ss:$0 sm:$0xff] }
 0x105   :  { %710 = vmatpush1.bf16.msra.mxu0 %v1592_v43 }
 0x106   :  { %711 = vmatprep.subr.bf16.mxu0 %v1597_v44 }
 0x109   :  { %712 = vmatpush1.bf16.msra.mxu0 %v1595_v45 }
 0x10a   :  { %713 = vmatprep.subr.bf16.mxu0 %v1600_v46  ;;  %v941_v46 = vstv %s1397_s0 }
 0x10d   :  { %714 = vmatpush1.bf16.msra.mxu0 %v1598_v47 }
 0x10e   :  { %715 = vmatprep.subr.bf16.mxu0 %v1603_v48 }
 0x111   :  { %716 = vmatpush1.bf16.msra.mxu0 %v1601_v49 }
 0x112   :  { %717 = vmatprep.subr.bf16.mxu0 %v1606_v50 }
 0x115   :  { %718 = vmatpush1.bf16.msra.mxu0 %v1604_v51 }
 0x116   :  { %719 = vmatprep.subr.bf16.mxu0 %v1609_v52 }
 0x119   :  { %720 = vmatpush1.bf16.msra.mxu0 %v1607_v53 }
 0x11a   :  { %721 = vmatprep.subr.bf16.mxu0 %v1612_v56 }
 0x11d   :  { %722 = vmatpush1.bf16.msra.mxu0 %v1610_v58  ;;  %v1655_v58 = vld [vmem:[%s2159_s9] sm:$0xff]  }
 0x11e   :  { %723 = vmatprep.subr.bf16.mxu0 %v1615_v59 }
 0x121   :  { %724 = vmatpush1.bf16.msra.mxu0 %v1613_v60  ;;  %v1656_v60 = vld [vmem:[%s2159_s9 + $0x8] sm:$0xff]  }
 0x122   :  { %725 = vmatprep.subr.bf16.mxu0 %v1618_v61  ;;  %v1657_v61 = vld [vmem:[%s2159_s9 + $0x10] sm:$0xff]  }
 0x125   :  { %726 = vmatpush1.bf16.msra.mxu0 %v1616_v62  ;;  %v1658_v62 = vld [vmem:[%s2159_s9 + $0x18] sm:$0xff]  }
 0x126   :  { %727 = vmatprep.subr.bf16.mxu0 %v1621_v63  ;;  %v1398_v63 = vld [vmem:[%s2158_s8] ss:$0 sm:$0xff] }
 0x129   :  { %728 = vmatpush1.bf16.msra.mxu0 %v1619_v0 }
 0x12a   :  { %729 = vmatprep.subr.bf16.mxu0 %v1624_v1  ;;  %v1062_v1 = vstv %s1407_s22 }
 0x12d   :  { %730 = vmatpush1.bf16.msra.mxu0 %v1622_v2 }
 0x12e   :  { %731 = vmatprep.subr.bf16.mxu0 %v1627_v3 }
 0x131   :  { %732 = vmatpush1.bf16.msra.mxu0 %v1625_v4 }
 0x132   :  { %733 = vmatprep.subr.bf16.mxu0 %v1630_v5 }
 0x135   :  { %734 = vmatpush1.bf16.msra.mxu0 %v1628_v6 }
 0x138   :  { %736 = vmatmul.mubr.bf16.vlgmr.msra.gmra.mrb[0].mxu0 %v262_v38  ;;  %v1652_v38 = vld [vmem:[%s2157_s7 + $0x28] sm:$0xff]  }
 0x20b   :  { %v737_v17 = vpop.f32.mrb[0].mxu0 }
 0x20c   :  { %v1510_v19 = vadd.f32 %v737_v17, %v333_v15  ;;  %v739_v20 = vpop.f32.mrb[1].mxu0  ;;  %v1155_v17 = vstv %s1414_s1 }
 0x20d   :  { %v1511_v21 = vadd.f32 %v739_v20, %v337_v16  ;;  %v741_v22 = vpop.f32.mrb[2].mxu0 }
 0x20e   :  { %v752_v23 = vmul.f32 %v1510_v19, %v751_v18  ;;  %v1512_v24 = vadd.f32 %v741_v22, %v333_v15  ;;  %v743_v25 = vpop.f32.mrb[3].mxu0  ;;  %vm746_vm9 = vcmp.ge.f32.partialorder %v1510_v19, 0.0  ;;  %v1408_v15 = vld [vmem:[%s2160_s10] ss:$0 sm:$0xff] }
 0x20f   :  { %v753_v26 = vmul.f32 %v1511_v21, %v751_v18  ;;  %v1513_v27 = vadd.f32 %v743_v25, %v337_v16  ;;  %vm747_vm10 = vcmp.ge.f32.partialorder %v1511_v21, 0.0 }
 0x210   :  { %vm748_vm11 = vcmp.ge.f32.partialorder %v1512_v24, 0.0  ;;  %v754_v28 = vmul.f32 %v1512_v24, %v751_v18  ;;  %v756_v29 = vsel %vm746_vm9, %v1510_v19, %v752_v23 }
 0x211   :  { %vm749_vm12 = vcmp.ge.f32.partialorder %v1513_v27, 0.0  ;;  %v755_v55 = vmul.f32 %v1513_v27, %v751_v18  ;;  %v757_v30 = vsel %vm747_vm10, %v1511_v21, %v753_v26 }
 0x212   :  { %v758_v54 = vsel %vm748_vm11, %v1512_v24, %v754_v28  ;;  %v1661_v28 = vld [vmem:[%s2163_s13] sm:$0xff]  }
 0x213   :  { %v760_v57 = vpack.c.bf16 %v758_v54, %v756_v29  ;;  %v759_v31 = vsel %vm749_vm12, %v1513_v27, %v755_v55  ;;  %v1415_v55 = vld [vmem:[%s2162_s12] ss:$0 sm:$0xff]  ;;  %v1231_v54 = vstv %s1419_s29 }
 0x214   :  { %v761_v32 = vpack.c.bf16 %v759_v31, %v757_v30 }
 0x216   :  { %929 = vmatprep.mubr.bf16.mxu1 %v761_v32 }
 0x217   :  { %930 = vmatmul.mubr.bf16.vlgmr.msra.gmra.mrb[8].mxu1 %v760_v57 }
 0x218   :  { %1465 = vmatpush3.bf16.msra.mxu1 %v1647_v33  ;;  %1480 = vmatprep.mubr.msk.bf16.mxu1 %vm1679_vm13, %v1678_v13 }
 0x219   :  { %1466 = vmatprep.subr.bf16.mxu1 %v1678_v13 }
 0x21c   :  { %1467 = vmatpush3.bf16.msra.mxu1 %v1648_v34 }
 0x21d   :  { %1468 = vmatprep.subr.bf16.mxu1 %v1678_v13 }
 0x220   :  { %1469 = vmatpush3.bf16.msra.mxu1 %v1649_v35 }
 0x221   :  { %1470 = vmatprep.subr.bf16.mxu1 %v1678_v13 }
 0x224   :  { %1471 = vmatpush3.bf16.msra.mxu1 %v1650_v36 }
 0x225   :  { %1472 = vmatprep.subr.bf16.mxu1 %v1678_v13 }
 0x228   :  { %1473 = vmatpush3.bf16.msra.mxu1 %v1651_v37 }
 0x229   :  { %1474 = vmatprep.subr.bf16.mxu1 %v1678_v13 }
 0x22c   :  { %1475 = vmatpush3.bf16.msra.mxu1 %v1652_v38  ;;  %v1420_v38 = vld [vmem:[%s2164_s14] ss:$0 sm:$0xff] }
 0x22d   :  { %1476 = vmatprep.subr.bf16.mxu1 %v1678_v13 }
 0x230   :  { %1477 = vmatpush3.bf16.msra.mxu1 %v1653_v39 }
 0x231   :  { %1478 = vmatprep.subr.bf16.mxu1 %v1678_v13 }
 0x234   :  { %1479 = vmatpush3.bf16.msra.mxu1 %v1654_v40 }
 0x235   :  { %1484 = vmatprep.subr.bf16.mxu1 %v1678_v13 }
 0x2ea   :  { %v1439_v41 = vpop.f32.mrb[8].mxu1 }
 0x2eb   :  { %v1440_v43 = vpop.f32.mrb[9].mxu1 }
 0x2ec   :  { %v1441_v44 = vadd.f32 %v1440_v43, %v1439_v41  ;;  %v1442_v45 = vpop.f32.mrb[10].mxu1 }
 0x2ed   :  { %v1443_v47 = vpop.f32.mrb[11].mxu1 }
 0x2ee   :  { %v932_v48 = vadd.f32 %v1441_v44, %v1380_v42  ;;  %v1444_v49 = vadd.f32 %v1443_v47, %v1442_v45 }
 0x2f0   :  { %v942_v50 = vmul.f32 %v941_v46, %v932_v48  ;;  %v935_v51 = vadd.f32 %v1444_v49, %v1380_v42  ;;  %vm938_vm14 = vcmp.ge.f32.partialorder %v932_v48, 0.0 }
 0x2f2   :  { %vm939_vm15 = vcmp.ge.f32.partialorder %v935_v51, 0.0  ;;  %v943_v52 = vmul.f32 %v941_v46, %v935_v51  ;;  %v944_v53 = vsel %vm938_vm14, %v932_v48, %v942_v50 }
 0x2f4   :  { %v945_v56 = vsel %vm939_vm15, %v935_v51, %v943_v52 }
 0x2f5   :  { %v946_v59 = vpack.c.bf16 %v945_v56, %v944_v53 }
 0x2f7   :  { %1481 = vmatmul.mubr.bf16.vlgmr.msra.gmra.mrb[12].mxu1 %v946_v59 }
 0x2f8   :  { %1485 = vmatpush3.bf16.msra.mxu1 %v1655_v58  ;;  %1492 = vmatprep.mubr.msk.bf16.mxu1 %vm1679_vm13, %v1678_v13 }
 0x2f9   :  { %1486 = vmatprep.subr.bf16.mxu1 %v1678_v13 }
 0x2fc   :  { %1487 = vmatpush3.bf16.msra.mxu1 %v1656_v60 }
 0x2fd   :  { %1488 = vmatprep.subr.bf16.mxu1 %v1678_v13 }
 0x300   :  { %1489 = vmatpush3.bf16.msra.mxu1 %v1657_v61 }
 0x301   :  { %1490 = vmatprep.subr.bf16.mxu1 %v1678_v13 }
 0x304   :  { %1491 = vmatpush3.bf16.msra.mxu1 %v1658_v62 }
 0x305   :  { %1496 = vmatprep.subr.bf16.mxu1 %v1678_v13 }
 0x3ca   :  { %v1052_v0 = vpop.f32.mrb[12].mxu1 }
 0x3cb   :  { %v1053_v2 = vadd.f32 %v1398_v63, %v1052_v0  ;;  %v1482_v3 = vpop.f32.mrb[13].mxu1 }
 0x3cc   :  { %v1055_v4 = vpop.f32.mrb[14].mxu1 }
 0x3cd   :  { %v1063_v5 = vmul.f32 %v1062_v1, %v1053_v2  ;;  %v1056_v6 = vadd.f32 %v1398_v63, %v1055_v4  ;;  %v1483_v7 = vpop.f32.mrb[15].mxu1  ;;  %vm1059_vm1 = vcmp.ge.f32.partialorder %v1053_v2, 0.0 }
 0x3cf   :  { %vm1060_vm2 = vcmp.ge.f32.partialorder %v1056_v6, 0.0  ;;  %v1064_v8 = vmul.f32 %v1062_v1, %v1056_v6  ;;  %v1065_v9 = vsel %vm1059_vm1, %v1053_v2, %v1063_v5 }
 0x3d1   :  { %v1066_v10 = vsel %vm1060_vm2, %v1056_v6, %v1064_v8 }
 0x3d2   :  { %v1067_v11 = vpack.c.bf16 %v1066_v10, %v1065_v9 }
 0x3d4   :  { %1493 = vmatmul.mubr.msk.bf16.vlgmr.msra.gmra.mrb[16].mxu1 %vm1107_vm3, %v1067_v11 }
 0x3d5   :  { %1500 = vmatprep.mubr.msk.bf16.mxu1 %vm1679_vm13, %v1678_v13  ;;  %1497 = vmatpush3.bf16.msra.mxu1 %v1659_v12 }
 0x3d6   :  { %1498 = vmatprep.subr.bf16.mxu1 %v1678_v13 }
 0x3d9   :  { %1499 = vmatpush3.bf16.msra.mxu1 %v1660_v14 }
 0x3da   :  { %1504 = vmatprep.subr.bf16.mxu1 %v1678_v13 }
 0x4a7   :  { %v1145_v16 = vpop.f32.mrb[16].mxu1 }
 0x4a8   :  { %v1146_v18 = vadd.f32 %v1408_v15, %v1145_v16  ;;  %v1494_v19 = vpop.f32.mrb[17].mxu1 }
 0x4a9   :  { %v1148_v20 = vpop.f32.mrb[18].mxu1 }
 0x4aa   :  { %v1156_v21 = vmul.f32 %v1155_v17, %v1146_v18  ;;  %v1149_v22 = vadd.f32 %v1408_v15, %v1148_v20  ;;  %v1495_v23 = vpop.f32.mrb[19].mxu1  ;;  %vm1152_vm4 = vcmp.ge.f32.partialorder %v1146_v18, 0.0 }
 0x4ac   :  { %vm1153_vm5 = vcmp.ge.f32.partialorder %v1149_v22, 0.0  ;;  %v1157_v24 = vmul.f32 %v1155_v17, %v1149_v22  ;;  %v1158_v25 = vsel %vm1152_vm4, %v1146_v18, %v1156_v21 }
 0x4ae   :  { %v1159_v26 = vsel %vm1153_vm5, %v1149_v22, %v1157_v24 }
 0x4af   :  { %v1160_v27 = vpack.c.bf16 %v1159_v26, %v1158_v25 }
 0x4b1   :  { %1501 = vmatmul.mubr.msk.bf16.vlgmr.msra.gmra.mrb[20].mxu1 %vm144_vm0, %v1160_v27 }
 0x4b2   :  { %1506 = vmatprep.mubr.msk.bf16.mxu1 %vm1679_vm13, %v1678_v13  ;;  %1505 = vmatpush3.bf16.msra.mxu1 %v1661_v28 }
 0x584   :  { %v1221_v29 = vpop.f32.mrb[20].mxu1 }
 0x585   :  { %v1222_v57 = vadd.f32 %v1415_v55, %v1221_v29  ;;  %v1502_v30 = vpop.f32.mrb[21].mxu1 }
 0x586   :  { %v1224_v31 = vpop.f32.mrb[22].mxu1 }
 0x587   :  { %v1232_v32 = vmul.f32 %v1231_v54, %v1222_v57  ;;  %v1225_v33 = vadd.f32 %v1415_v55, %v1224_v31  ;;  %v1503_v34 = vpop.f32.mrb[23].mxu1  ;;  %vm1228_vm0 = vcmp.ge.f32.partialorder %v1222_v57, 0.0 }
 0x589   :  { %vm1229_vm6 = vcmp.ge.f32.partialorder %v1225_v33, 0.0  ;;  %v1233_v13 = vmul.f32 %v1231_v54, %v1225_v33  ;;  %v1234_v35 = vsel %vm1228_vm0, %v1222_v57, %v1232_v32 }
 0x58b   :  { %v1235_v36 = vsel %vm1229_vm6, %v1225_v33, %v1233_v13 }
 0x58c   :  { %v1236_v37 = vpack.c.bf16 %v1235_v36, %v1234_v35 }
 0x58e   :  { %1507 = vmatmul.mubr.msk.bf16.vlgmr.msra.gmra.mrb[24].mxu1 %vm1252_vm7, %v1236_v37 }
 0x661   :  { %v1290_v39 = vpop.f32.mrb[24].mxu1 }
 0x662   :  { %v1291_v40 = vadd.f32 %v1420_v38, %v1290_v39  ;;  %v1508_v41 = vpop.f32.mrb[25].mxu1 }
 0x663   :  { %v1293_v42 = vpop.f32.mrb[26].mxu1 }
 0x664   :  { %1297 = vst [vmem:[%s2166_s16] sm:$0xff] %v1291_v40  ;;  %v1294_v43 = vadd.f32 %v1420_v38, %v1293_v42  ;;  %v1509_v44 = vpop.f32.mrb[27].mxu1 }
 0x666   :  { %1298 = vst [vmem:[%s2166_s16 + $0x8] sm:$0xff] %v1294_v43 }
 0x667   :  { %1303 = vsyncpa [#allocation3], 1 }

</bundles_post_ra>
